<compile_context>
chip_gen: v5e
topology: v5e:2x2
jax: 0.10.0
libtpu: 0.0.40
codegen_flags: <defaults>
</compile_context>

<pallas_src>
import jax
import jax.numpy as jnp
from jax import lax
from jax.experimental import pallas as pl
from jax.experimental.pallas import tpu as pltpu

VOCAB_SIZE = 50
EMBEDDING_DIM = 16
CONTEXT_SIZE = 2
HIDDEN = 128

KPAD = 64                       # per-context-slot one-hot padding (>= VOCAB_SIZE)
VPAD = 128                      # lane-dense padded vocab on the output axis
K1 = CONTEXT_SIZE * KPAD        # 128: fused (embedding+linear1) contraction dim

B_TILE_MIN = 128                # sublane-aligned minimum tile
B_TILE_MAX = 512                # amortizes ~0.35us/step; VMEM cost still tiny


def ngram_kernel(idx_ref, w1f_ref, b1_ref, w2_ref, b2_ref, out_ref):
    # idx_ref : (B_TILE, CONTEXT_SIZE) int32  token ids of this batch tile
    # w1f_ref : (K1, HIDDEN)   bf16  embedding table folded into linear1
    # b1_ref  : (1, HIDDEN)    f32
    # w2_ref  : (HIDDEN, VPAD) bf16  linear2 weight (transposed, vocab-padded w/ 0)
    # b2_ref  : (1, VPAD)      f32   linear2 bias; padded lanes hold -1e30 mask
    # out_ref : (B_TILE, VPAD) f32   log-probs (padded lanes are junk)

    idx = idx_ref[...]                                            # (B_TILE, CTX)
    bt = idx.shape[0]

    # One-hot over the fused contraction axis: lane l in [i*KPAD, (i+1)*KPAD)
    # fires iff l - i*KPAD == idx[:, i].  Static tiny loop over context slots.
    col = lax.broadcasted_iota(jnp.int32, (bt, K1), 1)
    hit = col == idx[:, 0:1]
    for i in range(1, CONTEXT_SIZE):
        hit = jnp.logical_or(hit, col == (idx[:, i:i + 1] + i * KPAD))
    onehot = hit.astype(jnp.bfloat16)                             # bool->bf16, exact 0/1

    # Fused embedding-gather + linear1: one (B_TILE, 128) @ (128, 128) MXU op.
    h = jnp.dot(onehot, w1f_ref[...],
                preferred_element_type=jnp.float32) + b1_ref[...]
    h = jnp.maximum(h, 0.0)                                       # ReLU

    # linear2: (B_TILE, 128) @ (128, 128).  Padded vocab lanes come out as
    # 0 + (-1e30) because w2's padded columns are zero and b2's are -1e30.
    logits = jnp.dot(h.astype(jnp.bfloat16), w2_ref[...],
                     preferred_element_type=jnp.float32) + b2_ref[...]

    # Numerically stable log_softmax over the (padded) vocab axis; padded lanes
    # contribute exp(-huge) == 0 to the normalizer.
    m = jnp.max(logits, axis=-1, keepdims=True)
    shifted = logits - m
    lse = jnp.log(jnp.sum(jnp.exp(shifted), axis=-1, keepdims=True))
    out_ref[...] = shifted - lse


def prepare_params(emb, w1, b1, w2, b2):
    """One-time weight prep (hoisted out of the per-call path).

    Folds the embedding table into linear1:
        h_pre = b1 + sum_i onehot_i @ (emb @ W1[:, i*D:(i+1)*D].T)
    which is exactly (emb[idx].flatten() @ W1.T + b1) reassociated.

    Invariants relied on by the kernel:
      * padded columns of w2_t_pad are exactly zero (jnp.pad),
      * padded lanes of b2_pad are -1e30 (acts as the log_softmax mask),
      * padded rows of emb (ids in [VOCAB_SIZE, KPAD)) are zero, so
        out-of-range ids map to zero embeddings instead of erroring.
    """
    d = EMBEDDING_DIM
    w1_t = w1.T.astype(jnp.float32)                               # (CTX*D, H)
    emb_pad = jnp.pad(emb.astype(jnp.float32),
                      ((0, KPAD - VOCAB_SIZE), (0, 0)))           # (KPAD, D)
    fused_w1 = jnp.concatenate(
        [emb_pad @ w1_t[i * d:(i + 1) * d, :] for i in range(CONTEXT_SIZE)],
        axis=0).astype(jnp.bfloat16)                              # (K1, H)
    w2_t_pad = jnp.pad(w2.T.astype(jnp.float32),
                       ((0, 0), (0, VPAD - VOCAB_SIZE))).astype(jnp.bfloat16)
    b1_2d = b1.reshape(1, HIDDEN).astype(jnp.float32)
    b2_pad = jnp.full((VPAD,), -1e30, jnp.float32)
    b2_pad = b2_pad.at[:VOCAB_SIZE].set(b2.astype(jnp.float32)).reshape(1, VPAD)
    return fused_w1, b1_2d, w2_t_pad, b2_pad


def _pick_b_tile(b):
    """Large tiles to amortize per-step overhead, but keep >= 2 grid steps when
    feasible so v7x's two TensorCores both get work (free choice on v5e/v6e)."""
    if b <= B_TILE_MIN:
        return B_TILE_MIN
    two_way = -(-b // 2)                        # ceil(b / 2)
    return min(B_TILE_MAX, -(-two_way // 128) * 128)


@jax.jit
def ngram_forward(idx, fused_w1, b1_2d, w2_t_pad, b2_pad):
    """idx: (B, CONTEXT_SIZE) int token ids -> (B_pad, VPAD) f32 log-prob slab.

    Returns the lane-dense padded slab (rows >= B and vocab lanes >= VOCAB_SIZE
    are junk); downstream consumers should index into it directly rather than
    paying a separate HBM pass to narrow it.
    """
    b = idx.shape[0]
    b_tile = _pick_b_tile(b)
    n_tiles = pl.cdiv(b, b_tile)
    b_pad = n_tiles * b_tile
    idx_pad = jnp.pad(idx.astype(jnp.int32), ((0, b_pad - b), (0, 0)))

    out = pl.pallas_call(
        ngram_kernel,
        out_shape=jax.ShapeDtypeStruct((b_pad, VPAD), jnp.float32),
        grid=(n_tiles,),
        in_specs=[
            pl.BlockSpec((b_tile, CONTEXT_SIZE), lambda i: (i, 0)),   # idx tile
            pl.BlockSpec((K1, HIDDEN), lambda i: (0, 0)),             # fused w1
            pl.BlockSpec((1, HIDDEN), lambda i: (0, 0)),              # b1
            pl.BlockSpec((HIDDEN, VPAD), lambda i: (0, 0)),           # w2^T pad
            pl.BlockSpec((1, VPAD), lambda i: (0, 0)),                # b2 pad+mask
        ],
        out_specs=pl.BlockSpec((b_tile, VPAD), lambda i: (i, 0)),
        compiler_params=pltpu.CompilerParams(
            dimension_semantics=("parallel",)),
    )(idx_pad, fused_w1, b1_2d, w2_t_pad, b2_pad)

    # TODO(synk): for realistic vocabs (10k-50k) tile the vocab axis of w2/logits
    # with an online log_softmax accumulator instead of one VPAD-wide block.
    return out


def reference_forward(idx, emb, w1, b1, w2, b2):
    """Pure-JAX f32 reference matching the PyTorch module per row."""
    embeds = emb[idx].reshape(idx.shape[0], -1)
    h = jnp.maximum(embeds @ w1.T + b1, 0.0)
    logits = h @ w2.T + b2
    return jax.nn.log_softmax(logits, axis=-1)


if __name__ == "__main__":
    key = jax.random.PRNGKey(0)
    k_emb, k_w1, k_b1, k_w2, k_b2, k_idx = jax.random.split(key, 6)

    # Parameters with nn.Module shapes.
    emb = jax.random.normal(k_emb, (VOCAB_SIZE, EMBEDDING_DIM), jnp.float32)
    w1 = jax.random.normal(k_w1, (HIDDEN, CONTEXT_SIZE * EMBEDDING_DIM),
                           jnp.float32) * 0.1
    b1 = jax.random.normal(k_b1, (HIDDEN,), jnp.float32) * 0.1
    w2 = jax.random.normal(k_w2, (VOCAB_SIZE, HIDDEN), jnp.float32) * 0.1
    b2 = jax.random.normal(k_b2, (VOCAB_SIZE,), jnp.float32) * 0.1

    # A small batch of contexts (200 -> two 128-row tiles, both TCs busy on v7x).
    batch = 200
    idx = jax.random.randint(k_idx, (batch, CONTEXT_SIZE), 0, VOCAB_SIZE,
                             jnp.int32)

    params = prepare_params(emb, w1, b1, w2, b2)        # hoisted, done once
    slab = jax.block_until_ready(ngram_forward(idx, *params))

    ref = reference_forward(idx, emb, w1, b1, w2, b2)
    # Narrowing to (batch, VOCAB_SIZE) is test-only; production consumers index
    # the padded slab directly (avoids an extra HBM pass).
    log_probs = slab[:batch, :VOCAB_SIZE]
    assert log_probs.shape == (batch, VOCAB_SIZE)
    # bf16 matmul operands (f32 accumulation) -> compare with a loose tolerance.
    max_err = float(jnp.max(jnp.abs(log_probs - ref)))
    assert jnp.allclose(log_probs, ref, atol=3e-2, rtol=1e-2), max_err

    # Single-context path (original module signature: one (CONTEXT_SIZE,) input).
    single_slab = jax.block_until_ready(ngram_forward(idx[:1], *params))
    single = single_slab[:1, :VOCAB_SIZE]
    assert single.shape == (1, VOCAB_SIZE)
    assert jnp.allclose(single, ref[:1], atol=3e-2, rtol=1e-2)

    print("KERNEL_OK")
</pallas_src>

<mosaic_0001>
module attributes {stable_mosaic.version = 11 : i64} {
  func.func @ngram_kernel(%arg0: i32, %arg1: memref<128x2xi32, #tpu.memory_space<vmem>>, %arg2: memref<128x128xbf16, #tpu.memory_space<vmem>>, %arg3: memref<1x128xf32, #tpu.memory_space<vmem>>, %arg4: memref<128x128xbf16, #tpu.memory_space<vmem>>, %arg5: memref<1x128xf32, #tpu.memory_space<vmem>>, %arg6: memref<128x128xf32, #tpu.memory_space<vmem>>) attributes {dimension_semantics = [#tpu.dimension_semantics<parallel>], iteration_bounds = array<i64: 2>, scalar_prefetch = 0 : i64, scratch_operands = 0 : i64, tpu.core_type = #tpu.core_type<tc>, window_params = [{transform_indices = @transform_0, window_bounds = array<i64: 128, 2>}, {pipeline_mode = #tpu.pipeline_mode<synchronous>, transform_indices = @transform_1, window_bounds = array<i64: 128, 128>}, {pipeline_mode = #tpu.pipeline_mode<synchronous>, transform_indices = @transform_2, window_bounds = array<i64: 1, 128>}, {pipeline_mode = #tpu.pipeline_mode<synchronous>, transform_indices = @transform_3, window_bounds = array<i64: 128, 128>}, {pipeline_mode = #tpu.pipeline_mode<synchronous>, transform_indices = @transform_4, window_bounds = array<i64: 1, 128>}, {transform_indices = @transform_5, window_bounds = array<i64: 128, 128>}]} {
    %c0 = arith.constant 0 : index
    %c0_0 = arith.constant 0 : index
    %0 = vector.load %arg1[%c0, %c0_0] : memref<128x2xi32, #tpu.memory_space<vmem>>, vector<128x2xi32>
    %1 = tpu.iota {dimensions = array<i32: 1>} : vector<128x128xi32>
    %2 = vector.extract_strided_slice %0 {offsets = [0, 0], sizes = [128, 1], strides = [1, 1]} : vector<128x2xi32> to vector<128x1xi32>
    %3 = vector.broadcast %2 : vector<128x1xi32> to vector<128x128xi32>
    %4 = arith.cmpi eq, %1, %3 : vector<128x128xi32>
    %5 = vector.extract_strided_slice %0 {offsets = [0, 1], sizes = [128, 1], strides = [1, 1]} : vector<128x2xi32> to vector<128x1xi32>
    %c64_i32 = arith.constant 64 : i32
    %6 = vector.broadcast %c64_i32 : i32 to vector<128x1xi32>
    %7 = arith.addi %5, %6 : vector<128x1xi32>
    %8 = vector.broadcast %7 : vector<128x1xi32> to vector<128x128xi32>
    %9 = arith.cmpi eq, %1, %8 : vector<128x128xi32>
    %10 = arith.ori %4, %9 : vector<128x128xi1>
    %11 = arith.extui %10 : vector<128x128xi1> to vector<128x128xi32>
    %12 = arith.sitofp %11 : vector<128x128xi32> to vector<128x128xf32>
    %13 = arith.truncf %12 : vector<128x128xf32> to vector<128x128xbf16>
    %c0_1 = arith.constant 0 : index
    %c0_2 = arith.constant 0 : index
    %14 = vector.load %arg2[%c0_1, %c0_2] : memref<128x128xbf16, #tpu.memory_space<vmem>>, vector<128x128xbf16>
    %cst = arith.constant dense<0.000000e+00> : vector<128x128xf32>
    %15 = tpu.matmul %13, %14, %cst {dimension_numbers = #tpu.dot_dimension_numbers<[1], [0], [0], [1], [0, 0, 1, 1], [], []>} : vector<128x128xbf16>, vector<128x128xbf16>, vector<128x128xf32> -> vector<128x128xf32>
    %c0_3 = arith.constant 0 : index
    %c0_4 = arith.constant 0 : index
    %16 = vector.load %arg3[%c0_3, %c0_4] : memref<1x128xf32, #tpu.memory_space<vmem>>, vector<1x128xf32>
    %17 = vector.broadcast %16 : vector<1x128xf32> to vector<128x128xf32>
    %18 = arith.addf %15, %17 : vector<128x128xf32>
    %cst_5 = arith.constant 0.000000e+00 : f32
    %19 = vector.broadcast %cst_5 : f32 to vector<128x128xf32>
    %20 = arith.maximumf %18, %19 : vector<128x128xf32>
    %21 = arith.truncf %20 : vector<128x128xf32> to vector<128x128xbf16>
    %c0_6 = arith.constant 0 : index
    %c0_7 = arith.constant 0 : index
    %22 = vector.load %arg4[%c0_6, %c0_7] : memref<128x128xbf16, #tpu.memory_space<vmem>>, vector<128x128xbf16>
    %cst_8 = arith.constant dense<0.000000e+00> : vector<128x128xf32>
    %23 = tpu.matmul %21, %22, %cst_8 {dimension_numbers = #tpu.dot_dimension_numbers<[1], [0], [0], [1], [0, 0, 1, 1], [], []>} : vector<128x128xbf16>, vector<128x128xbf16>, vector<128x128xf32> -> vector<128x128xf32>
    %c0_9 = arith.constant 0 : index
    %c0_10 = arith.constant 0 : index
    %24 = vector.load %arg5[%c0_9, %c0_10] : memref<1x128xf32, #tpu.memory_space<vmem>>, vector<1x128xf32>
    %25 = vector.broadcast %24 : vector<1x128xf32> to vector<128x128xf32>
    %26 = arith.addf %23, %25 : vector<128x128xf32>
    %cst_11 = arith.constant dense<0xFF800000> : vector<128xf32>
    %27 = vector.multi_reduction <maximumf>, %26, %cst_11 [1] : vector<128x128xf32> to vector<128xf32>
    %28 = vector.shape_cast %27 : vector<128xf32> to vector<128x1xf32>
    %29 = vector.broadcast %28 : vector<128x1xf32> to vector<128x128xf32>
    %30 = arith.subf %26, %29 : vector<128x128xf32>
    %31 = math.exp %30 : vector<128x128xf32>
    %cst_12 = arith.constant dense<0.000000e+00> : vector<128xf32>
    %32 = vector.multi_reduction <add>, %31, %cst_12 [1] : vector<128x128xf32> to vector<128xf32>
    %33 = vector.shape_cast %32 : vector<128xf32> to vector<128x1xf32>
    %34 = math.log %33 : vector<128x1xf32>
    %35 = vector.broadcast %34 : vector<128x1xf32> to vector<128x128xf32>
    %36 = arith.subf %30, %35 : vector<128x128xf32>
    %c0_13 = arith.constant 0 : index
    %c0_14 = arith.constant 0 : index
    %37 = vector.load %arg6[%c0_13, %c0_14] : memref<128x128xf32, #tpu.memory_space<vmem>>, vector<128x128xf32>
    tpu.vector_store %arg6[%c0_13, %c0_14], %36 {strides = array<i32>} : memref<128x128xf32, #tpu.memory_space<vmem>>, vector<128x128xf32>,
    return
  }
  func.func @transform_0(%arg0: i32) -> (i32, i32) {
    %c0_i32 = arith.constant 0 : i32
    %c0_i32_0 = arith.constant 0 : i32
    return %arg0, %c0_i32 : i32, i32
  }
  func.func @transform_1(%arg0: i32) -> (i32, i32) {
    %c0_i32 = arith.constant 0 : i32
    %c0_i32_0 = arith.constant 0 : i32
    %c0_i32_1 = arith.constant 0 : i32
    return %c0_i32, %c0_i32_0 : i32, i32
  }
  func.func @transform_2(%arg0: i32) -> (i32, i32) {
    %c0_i32 = arith.constant 0 : i32
    %c0_i32_0 = arith.constant 0 : i32
    %c0_i32_1 = arith.constant 0 : i32
    return %c0_i32, %c0_i32_0 : i32, i32
  }
  func.func @transform_3(%arg0: i32) -> (i32, i32) {
    %c0_i32 = arith.constant 0 : i32
    %c0_i32_0 = arith.constant 0 : i32
    %c0_i32_1 = arith.constant 0 : i32
    return %c0_i32, %c0_i32_0 : i32, i32
  }
  func.func @transform_4(%arg0: i32) -> (i32, i32) {
    %c0_i32 = arith.constant 0 : i32
    %c0_i32_0 = arith.constant 0 : i32
    %c0_i32_1 = arith.constant 0 : i32
    return %c0_i32, %c0_i32_0 : i32, i32
  }
  func.func @transform_5(%arg0: i32) -> (i32, i32) {
    %c0_i32 = arith.constant 0 : i32
    %c0_i32_0 = arith.constant 0 : i32
    return %arg0, %c0_i32 : i32, i32
  }
}

</mosaic_0001>

<bundles_post_ra>
// kernel: ngram_forward.1
= control target key start
LH: loop header
LB: loop body
LE: loop exit
PB: predicated region body
PF: predicated region fallthrough
CT: control target
= control target key end

     0   :  { %10 = vsyncpa [#allocation3], 0  ;;  %s1659_s0 = inlined_call_operand.vmem [shape: s32[256,2], index: 0, kind: input, shape index: {}]   ;;  %s1660_s1 = inlined_call_operand.vmem [shape: bf16[128,128], index: 1, kind: input, shape index: {}]   ;;  %s1661_s2 = inlined_call_operand.vmem [shape: f32[1,128], index: 2, kind: input, shape index: {}]   ;;  %s1662_s3 = inlined_call_operand.vmem [shape: bf16[128,128], index: 3, kind: input, shape index: {}]   ;;  %s1663_s4 = inlined_call_operand.vmem [shape: f32[1,128], index: 4, kind: input, shape index: {}]   ;;  %s1664_s5 = inlined_call_operand.hbm [shape: f32[256,128], index: 5, kind: output, shape index: {}]  }
   0x1   :  { %12 = vsyncpa [#allocation3 + $0x1], 0  ;;  %s1324_s18 = smov 0   ;;  %s1326_s19 = smov 0  }
   0x2   :  { %s1328_s20 = smov 0   ;;  %s1330_s21 = smov 0  }
   0x3 LB: > { %s1345_s22 = sadd.s32 4294967295, %s1287_s21   ;;  %s956_s23 = sadd.s32 4294967294, %s1287_s21   ;;  %s1287_s21 = sphi %s1330_s21, %s1670_s21   ;;  %s1283_s20 = sphi %s1328_s20, %s1669_s20   ;;  %s1279_s19 = sphi %s1326_s19, %s1668_s19   ;;  %s1275_s18 = sphi %s1324_s18, %s1667_s18  }
   0x4   : > { %s1349_s24 = sadd.s32 1, %s1287_s21   ;;  %s135_s25 = sadd.s32 1, %s1283_s20 }
   0x5   : > { %s132_s26 = ssub.s32 %s1287_s21, %s1349_s24  ;;  %p145_p0 = scmp.ne.s32.totalorder %s1283_s20, %s1279_s19 }
   0x6   : > { %p133_p1 = scmp.eq.s32.totalorder %s132_s26, 0  ;;  %p146_p2 = scmp.eq.s32.totalorder %s1345_s22, 1 }
   0x7   : > { %p151_p3 = scmp.ne.s32.totalorder %s1279_s19, %s1275_s18  ;;  %p152_p4 = scmp.eq.s32.totalorder %s956_s23, 1 }
   0x8   : > { %s1360_s27 = scalar_select %p133_p1, %s1283_s20, %s135_s25  }
   0x9   : > { %p1362_p5 = por %p146_p2, %p145_p0  ;;  %p1366_p6 = por %p152_p4, %p151_p3 }
   0xa   : > { %p959_p7 = scmp.ge.s32.totalorder %s1287_s21, 1  ;;  %p191_p8 = scmp.lt.s32.totalorder %s1287_s21, 3 }
   0xc   : > { %p192_p9 = pnand %p959_p7, %p191_p8 }
   0xd   : > { %s961_s30 = sshll.u32 (!%p192_p9), %s1345_s22, 4  ;;  %s216_s14 = sand.u32 (!%p192_p9), 1, %s1279_s19  }
   0xe   : > { %195 = sbr.rel (%p192_p9) target bundleno = 779 (0x30b), region = 40  ;;  %p220_p10 = scmp.lt.s32.totalorder (!%p192_p9), %s961_s30, 31 }
   0xf   : > { %s960_s15 = sshll.u32 (!%p192_p9), %s216_s14, 7  ;;  %s1080_s17 = sshll.u32 (!%p192_p9), %s1345_s22, 7 }
  0x10   : > { %s1592_s16 = scalar_lea.vmem (!%p192_p9), [#allocation2], %s960_s15  ;;  %s890_s26 = scalar_lea.hbm (!%p192_p9), %s1664_s5, %s1080_s17 }
  0x11   : > { %s879_s22 = scalar_lea.sflag (!%p192_p9), [#allocation3], %s216_s14  ;;  %s1245_s11 = scalar_lea.hbm (!%p192_p9), %s1664_s5, 256 }
  0x13   : > { %v1289_v0 = vmov 0   ;;  %v1290_v1 = vmov 1   ;;  %s1672_s30 = smov (!%p220_p10, %s961_s30), 31  ;;  %v1071_v29 = vld [vmem:[%s1660_s1 + $0x38] sm:$0xff]  ;;  %v1070_v31 = vld [vmem:[%s1660_s1 + $0x30] sm:$0xff]  ;;  %v1069_v33 = vld [vmem:[%s1660_s1 + $0x28] sm:$0xff]  ;;  %v242_v44 = vlaneseq }
  0x14   : > { %1141 = vset.pattern.permute.xlu0 %v1289_v0  ;;  %1143 = vset.pattern.permute.xlu1 %v1290_v1  ;;  %s962_s6 = sshll.u32 %s1672_s30, 3  ;;  %v1068_v35 = vld [vmem:[%s1660_s1 + $0x20] sm:$0xff]  ;;  %v1067_v36 = vld [vmem:[%s1660_s1 + $0x18] sm:$0xff]  ;;  %v1066_v37 = vld [vmem:[%s1660_s1 + $0x10] sm:$0xff]  ;;  %v1291_v51 = vmov 1.0|1.0  }
  0x15   : > { %1142 = vset.pattern.permute.xlu2 %v1289_v0  ;;  %s1379_s9 = scalar_lea.vmem %s1659_s0, %s962_s6  ;;  %1081 = vmatpush.bf16.msra.mxu2 %v1071_v29  ;;  %v1065_v39 = vld [vmem:[%s1660_s1 + $0x8] sm:$0xff]  ;;  %v1064_v40 = vld [vmem:[%s1660_s1] sm:$0xff]  ;;  %v1436_v47 = vand.u32 127, %v242_v44  ;;  %s891_s30 = sshll.u32 %s1592_s16, 4  ;;  %s892_s30 = int_to_ptr.vmem [resolvable:$true] %s891_s30 }
  0x16   : > { %v234_v2 = vld [vmem:[%s1379_s9 + $0x40] sm:$0xff]  ;;  %v235_v5 = vld [vmem:[%s1379_s9 + $0x48] sm:$0xff]  ;;  %v236_v9 = vld [vmem:[%s1379_s9 + $0x50] sm:$0xff]  ;;  %512 = vmatpush.bf16.msra.mxu0 %v1071_v29  ;;  %s893_s6 = sshll.u32 %s890_s26, 4  ;;  %s894_s6 = int_to_ptr.hbm [resolvable:$true] %s893_s6 }
  0x17   : > { %v226_v3 = vld [vmem:[%s1379_s9] sm:$0xff]  ;;  %269 = vperm.xlu0 %1141, %v234_v2   ;;  %v316_v4 = vadd.s32 64, %v234_v2  ;;  %v227_v6 = vld [vmem:[%s1379_s9 + $0x8] sm:$0xff]  ;;  %v317_v7 = vadd.s32 64, %v235_v5  ;;  %v237_v11 = vld [vmem:[%s1379_s9 + $0x58] sm:$0xff]  ;;  %v318_v12 = vadd.s32 64, %v236_v9 }
  0x18   : > { %245 = vperm.xlu2 %1142, %v226_v3   ;;  %v308_v8 = vadd.s32 64, %v226_v3  ;;  %v309_v10 = vadd.s32 64, %v227_v6  ;;  %v319_v13 = vadd.s32 64, %v237_v11  ;;  %v228_v14 = vld [vmem:[%s1379_s9 + $0x10] sm:$0xff]  ;;  %v229_v16 = vld [vmem:[%s1379_s9 + $0x18] sm:$0xff]  ;;  %v239_v17 = vld [vmem:[%s1379_s9 + $0x68] sm:$0xff] }
  0x19   : > { %349 = vperm.xlu1 %1143, %v316_v4   ;;  %v310_v15 = vadd.s32 64, %v228_v14  ;;  %v311_v18 = vadd.s32 64, %v229_v16  ;;  %v238_v19 = vld [vmem:[%s1379_s9 + $0x60] sm:$0xff]  ;;  %v321_v21 = vadd.s32 64, %v239_v17  ;;  %v241_v24 = vld [vmem:[%s1379_s9 + $0x78] sm:$0xff]  ;;  %v231_v26 = vld [vmem:[%s1379_s9 + $0x28] sm:$0xff]  ;;  %1082 = vmatpush.bf16.msra.mxu2 %v1070_v31 }
  0x1a   : > { %v230_v20 = vld [vmem:[%s1379_s9 + $0x20] sm:$0xff]  ;;  %v320_v23 = vadd.s32 64, %v238_v19  ;;  %v323_v25 = vadd.s32 64, %v241_v24  ;;  %v232_v27 = vld [vmem:[%s1379_s9 + $0x30] sm:$0xff]  ;;  %v313_v32 = vadd.s32 64, %v231_v26  ;;  %513 = vmatpush.bf16.msra.mxu0 %v1070_v31  ;;  %v233_v38 = vld [vmem:[%s1379_s9 + $0x38] sm:$0xff] }
  0x1b   : > { %v312_v22 = vadd.s32 64, %v230_v20  ;;  %v314_v28 = vadd.s32 64, %v232_v27  ;;  %v240_v30 = vld [vmem:[%s1379_s9 + $0x70] sm:$0xff]  ;;  %v315_v41 = vadd.s32 64, %v233_v38  ;;  %s1239_s7 = sshra.s32 %s894_s6, 4  ;;  %s1240_s7 = int_to_ptr.hbm [resolvable:$true] %s1239_s7 }
  0x1c   : > { %v322_v34 = vadd.s32 64, %v240_v30  ;;  %s1241_s8 = scalar_lea.hbm %s1240_s7, 128  ;;  %p1246_p0 = scmp.lt.s32.totalorder %s1240_s7, %s1664_s5 }
  0x1d   : > { %1083 = vmatpush.bf16.msra.mxu2 %v1069_v33  ;;  %p1242_p11 = scmp.ne.s32.totalorder %s1240_s7, %s1241_s8  ;;  %p1247_p1 = scmp.lt.s32.totalorder %s1245_s11, %s1241_s8 }
  0x1e   : > { %514 = vmatpush.bf16.msra.mxu0 %v1069_v33 }
  0x1f   : > { %272 = vperm.xlu0 %1141, %v235_v5   ;;  %v1079_v5 = vld [vmem:[%s1662_s3 + $0x38] sm:$0xff]  ;;  %p1243_p12 = pnand %p1242_p11, %p1362_p5  ;;  %p1248_p2 = por %p1247_p1, %p1246_p0 }
  0x20   : > { %248 = vperm.xlu2 %1142, %v227_v6   ;;  %1089 = vmatpush.bf16.msra.mxu3 %v1079_v5 }
  0x21   : > { %352 = vperm.xlu1 %1143, %v317_v7   ;;  %1084 = vmatpush.bf16.msra.mxu2 %v1068_v35  ;;  %v1078_v7 = vld [vmem:[%s1662_s3 + $0x30] sm:$0xff]  ;;  %p1244_p13 = pneg %p1243_p12 }
  0x22   : > { %515 = vmatpush.bf16.msra.mxu0 %v1068_v35  ;;  %653 = vmatpush.bf16.msra.mxu1 %v1079_v5 }
  0x23   : > { %p1249_p3 = pnand %p1248_p2, %p1244_p13 }
  0x24   : > { %1090 = vmatpush.bf16.msra.mxu3 %v1078_v7 }
  0x25   : > { %1085 = vmatpush.bf16.msra.mxu2 %v1067_v36 }
  0x26   : > { %516 = vmatpush.bf16.msra.mxu0 %v1067_v36  ;;  %654 = vmatpush.bf16.msra.mxu1 %v1078_v7 }
  0x27   : > { %1144 = vset.pattern.permute.xlu0 %v1290_v1 }
  0x28   : > { %275 = vperm.xlu2 %1142, %v236_v9   ;;  %325 = vperm.xlu0 %1144, %v308_v8   ;;  %v1077_v9 = vld [vmem:[%s1662_s3 + $0x28] sm:$0xff] }
  0x29   : > { %328 = vperm.xlu1 %1143, %v309_v10   ;;  %1086 = vmatpush.bf16.msra.mxu2 %v1066_v37 }
  0x2a   : > { %517 = vmatpush.bf16.msra.mxu0 %v1066_v37  ;;  %1091 = vmatpush.bf16.msra.mxu3 %v1077_v9 }
  0x2b   : > { %655 = vmatpush.bf16.msra.mxu1 %v1077_v9 }
  0x2d   : > { %1087 = vmatpush.bf16.msra.mxu2 %v1065_v39 }
  0x2e   : > { %518 = vmatpush.bf16.msra.mxu0 %v1065_v39 }
  0x30   : > { %1146 = vset.pattern.permute.xlu2 %v1290_v1  ;;  %358 = vperm.xlu0 %1144, %v319_v13  }
  0x31   : > { %355 = vperm.xlu2 %1146, %v318_v12   ;;  %1145 = vset.pattern.permute.xlu1 %v1289_v0 }
  0x32   : > { %278 = vperm.xlu1 %1145, %v237_v11   ;;  %1088 = vmatpush.bf16.msra.mxu2 %v1064_v40  ;;  %v1076_v11 = vld [vmem:[%s1662_s3 + $0x20] sm:$0xff] }
  0x33   : > { %519 = vmatpush.bf16.msra.mxu0 %v1064_v40  ;;  %1092 = vmatpush.bf16.msra.mxu3 %v1076_v11 }
  0x34   : > { %656 = vmatpush.bf16.msra.mxu1 %v1076_v11 }
  0x38   : > { %331 = vperm.xlu0 %1144, %v310_v15  }
  0x39   : > { %1147 = vset.pattern.permute.xlu2 %v1289_v0 }
  0x3a   : > { %254 = vperm.xlu2 %1147, %v229_v16   ;;  %251 = vperm.xlu1 %1145, %v228_v14  }
  0x40   : > { %1149 = vset.pattern.permute.xlu0 %v1289_v0 }
  0x41   : > { %284 = vperm.xlu0 %1149, %v239_v17   ;;  %v1075_v17 = vld [vmem:[%s1662_s3 + $0x18] sm:$0xff] }
  0x42   : > { %281 = vperm.xlu2 %1147, %v238_v19   ;;  %1148 = vset.pattern.permute.xlu1 %v1290_v1  ;;  %v1073_v19 = vld [vmem:[%s1662_s3 + $0x8] sm:$0xff] }
  0x43   : > { %334 = vperm.xlu1 %1148, %v311_v18   ;;  %1093 = vmatpush.bf16.msra.mxu3 %v1075_v17  ;;  %v1074_v18 = vld [vmem:[%s1662_s3 + $0x10] sm:$0xff] }
  0x44   : > { %657 = vmatpush.bf16.msra.mxu1 %v1075_v17 }
  0x47   : > { %1094 = vmatpush.bf16.msra.mxu3 %v1074_v18 }
  0x48   : > { %658 = vmatpush.bf16.msra.mxu1 %v1074_v18 }
  0x49   : > { %1153 = vset.pattern.permute.xlu0 %v1290_v1 }
  0x4a   : > { %1150 = vset.pattern.permute.xlu2 %v1290_v1  ;;  %337 = vperm.xlu0 %1153, %v312_v22  }
  0x4b   : > { %364 = vperm.xlu2 %1150, %v321_v21   ;;  %361 = vperm.xlu1 %1148, %v320_v23   ;;  %v1159_v23 = vld [vmem:[%s1661_s2] ss:$0 sm:$0xff] }
  0x4c   : > { %1095 = vmatpush.bf16.msra.mxu3 %v1073_v19  ;;  %659 = vmatpush.bf16.msra.mxu1 %v1073_v19 }
  0x52   : > { %370 = vperm.xlu0 %1153, %v323_v25  }
  0x53   : > { %1152 = vset.pattern.permute.xlu2 %v1289_v0  ;;  %1151 = vset.pattern.permute.xlu1 %v1289_v0 }
  0x54   : > { %260 = vperm.xlu2 %1152, %v231_v26   ;;  %257 = vperm.xlu1 %1151, %v230_v20   ;;  %v1072_v20 = vld [vmem:[%s1662_s3] sm:$0xff] }
  0x55   : > { %1096 = vmatpush.bf16.msra.mxu3 %v1072_v20  ;;  %660 = vmatpush.bf16.msra.mxu1 %v1072_v20 }
  0x5a   : > { %343 = vperm.xlu0 %1153, %v314_v28  }
  0x5c   : > { %287 = vperm.xlu2 %1152, %v240_v30   ;;  %1154 = vset.pattern.permute.xlu1 %v1290_v1 }
  0x5d   : > { %340 = vperm.xlu1 %1154, %v313_v32  }
  0x64   : > { %1156 = vset.pattern.permute.xlu2 %v1290_v1 }
  0x65   : > { %367 = vperm.xlu2 %1156, %v322_v34   ;;  %1155 = vset.pattern.permute.xlu1 %v1289_v0 }
  0x66   : > { %290 = vperm.xlu1 %1155, %v241_v24  }
  0x6d   : > { %1157 = vset.pattern.permute.xlu2 %v1289_v0 }
  0x6e   : > { %266 = vperm.xlu2 %1157, %v233_v38   ;;  %263 = vperm.xlu1 %1155, %v232_v27  }
  0x72   : > { %v246_v42 = vpop.permute.xlu2 %245 }
  0x73   : > { %vm292_vm7 = vcmp.eq.s32.totalorder %v1436_v47, %v246_v42 }
  0x76   : > { %1158 = vset.pattern.permute.xlu1 %v1290_v1 }
  0x77   : > { %346 = vperm.xlu1 %1158, %v315_v41  }
  0x7a   : > { %v249_v43 = vpop.permute.xlu2 %248 }
  0x7b   : > { %vm293_vm9 = vcmp.eq.s32.totalorder %v1436_v47, %v249_v43 }
  0x82   : > { %v276_v48 = vpop.permute.xlu2 %275 }
  0x83   : > { %vm302_vm14 = vcmp.eq.s32.totalorder %v1436_v47, %v276_v48 }
  0x89   : > { %v270_v45 = vpop.permute.xlu0 %269 }
  0x8a   : > { %vm300_vm0 = vcmp.eq.s32.totalorder %v1436_v47, %v270_v45 }
  0x8b   : > { %v350_v46 = vpop.permute.xlu1 %349  ;;  %v356_v52 = vpop.permute.xlu2 %355 }
  0x8c   : > { %vm380_vm1 = vcmp.eq.s32.totalorder %v1436_v47, %v350_v46  ;;  %vm382_vm15 = vcmp.eq.s32.totalorder %v1436_v47, %v356_v52 }
  0x8d   : > { %vm396_vm3 = vmor %vm300_vm0, %vm380_vm1 }
  0x8e   : > { %vm398_vm1 = vmor %vm302_vm14, %vm382_vm15 }
  0x91   : > { %v273_v49 = vpop.permute.xlu0 %272 }
  0x92   : > { %vm301_vm2 = vcmp.eq.s32.totalorder %v1436_v47, %v273_v49 }
  0x93   : > { %v353_v50 = vpop.permute.xlu1 %352 }
  0x94   : > { %vm381_vm4 = vcmp.eq.s32.totalorder %v1436_v47, %v353_v50  ;;  %v255_v55 = vpop.permute.xlu2 %254 }
  0x95   : > { %vm397_vm5 = vmor %vm301_vm2, %vm381_vm4 }
  0x96   : > { %vm1019_vm6 = vmpackc.low %vm397_vm5, %vm396_vm3 }
  0x97   : > { %1020 = vmatmul.msk.bf16.vlgmr.msra.gmra.mxu2 %vm1019_vm6, %v1291_v51 }
  0x9a   : > { %v326_v53 = vpop.permute.xlu0 %325 }
  0x9b   : > { %vm372_vm8 = vcmp.eq.s32.totalorder %v1436_v47, %v326_v53  ;;  %v329_v54 = vpop.permute.xlu1 %328 }
  0x9c   : > { %vm388_vm10 = vmor %vm292_vm7, %vm372_vm8  ;;  %vm373_vm11 = vcmp.eq.s32.totalorder %v1436_v47, %v329_v54  ;;  %v282_v58 = vpop.permute.xlu2 %281  ;;  %vm295_vm7 = vcmp.eq.s32.totalorder %v1436_v47, %v255_v55 }
  0x9d   : > { %vm389_vm12 = vmor %vm293_vm9, %vm373_vm11  ;;  %vm304_vm15 = vcmp.eq.s32.totalorder %v1436_v47, %v282_v58 }
  0x9e   : > { %vm1011_vm13 = vmpackc.low %vm389_vm12, %vm388_vm10 }
  0x9f   : > { %1012 = vmatmul.msk.bf16.vlgmr.msra.gmra.mxu0 %vm1011_vm13, %v1291_v51 }
  0xa2   : > { %v359_v56 = vpop.permute.xlu0 %358 }
  0xa3   : > { %vm383_vm0 = vcmp.eq.s32.totalorder %v1436_v47, %v359_v56 }
  0xa4   : > { %v279_v57 = vpop.permute.xlu1 %278 }
  0xa5   : > { %vm303_vm2 = vcmp.eq.s32.totalorder %v1436_v47, %v279_v57  ;;  %v365_v62 = vpop.permute.xlu2 %364 }
  0xa6   : > { %vm399_vm3 = vmor %vm303_vm2, %vm383_vm0  ;;  %vm385_vm12 = vcmp.eq.s32.totalorder %v1436_v47, %v365_v62 }
  0xa7   : > { %vm1021_vm4 = vmpackc.low %vm399_vm3, %vm398_vm1 }
  0xa8   : > { %1022 = vmatmul.msk.bf16.gmra.mxu2 %vm1021_vm4, %v1291_v51 }
  0xaa   : > { %v332_v60 = vpop.permute.xlu0 %331 }
  0xab   : > { %vm374_vm6 = vcmp.eq.s32.totalorder %v1436_v47, %v332_v60 }
  0xac   : > { %v252_v59 = vpop.permute.xlu1 %251 }
  0xad   : > { %vm294_vm5 = vcmp.eq.s32.totalorder %v1436_v47, %v252_v59 }
  0xae   : > { %vm390_vm8 = vmor %vm294_vm5, %vm374_vm6  ;;  %v261_v1 = vpop.permute.xlu2 %260 }
  0xaf   : > { %vm297_vm5 = vcmp.eq.s32.totalorder %v1436_v47, %v261_v1 }
  0xb3   : > { %v285_v63 = vpop.permute.xlu0 %284 }
  0xb4   : > { %vm305_vm13 = vcmp.eq.s32.totalorder %v1436_v47, %v285_v63 }
  0xb5   : > { %v335_v61 = vpop.permute.xlu1 %334  ;;  %vm401_vm14 = vmor %vm305_vm13, %vm385_vm12 }
  0xb6   : > { %vm375_vm9 = vcmp.eq.s32.totalorder %v1436_v47, %v335_v61  ;;  %v288_v3 = vpop.permute.xlu2 %287 }
  0xb7   : > { %vm391_vm10 = vmor %vm295_vm7, %vm375_vm9 }
  0xb8   : > { %vm1013_vm11 = vmpackc.low %vm391_vm10, %vm390_vm8  ;;  %vm306_vm10 = vcmp.eq.s32.totalorder %v1436_v47, %v288_v3 }
  0xb9   : > { %1014 = vmatmul.msk.bf16.gmra.mxu0 %vm1013_vm11, %v1291_v51 }
  0xbc   : > { %v338_v4 = vpop.permute.xlu0 %337 }
  0xbd   : > { %v362_v0 = vpop.permute.xlu1 %361  ;;  %vm376_vm4 = vcmp.eq.s32.totalorder %v1436_v47, %v338_v4 }
  0xbe   : > { %vm384_vm0 = vcmp.eq.s32.totalorder %v1436_v47, %v362_v0 }
  0xbf   : > { %vm400_vm1 = vmor %vm304_vm15, %vm384_vm0  ;;  %v368_v8 = vpop.permute.xlu2 %367 }
  0xc0   : > { %vm1023_vm2 = vmpackc.low %vm401_vm14, %vm400_vm1  ;;  %vm386_vm11 = vcmp.eq.s32.totalorder %v1436_v47, %v368_v8 }
  0xc1   : > { %1024 = vmatmul.msk.bf16.gmra.mxu2 %vm1023_vm2, %v1291_v51  ;;  %vm402_vm13 = vmor %vm306_vm10, %vm386_vm11 }
  0xc4   : > { %v371_v10 = vpop.permute.xlu0 %370 }
  0xc5   : > { %vm387_vm12 = vcmp.eq.s32.totalorder %v1436_v47, %v371_v10 }
  0xc6   : > { %v258_v2 = vpop.permute.xlu1 %257 }
  0xc7   : > { %vm296_vm3 = vcmp.eq.s32.totalorder %v1436_v47, %v258_v2 }
  0xc8   : > { %vm392_vm6 = vmor %vm296_vm3, %vm376_vm4  ;;  %v267_v14 = vpop.permute.xlu2 %266 }
  0xc9   : > { %vm299_vm2 = vcmp.eq.s32.totalorder %v1436_v47, %v267_v14  ;;  %v1160_v14 = vld [vmem:[%s1663_s4] ss:$0 sm:$0xff] }
  0xcc   : > { %v344_v15 = vpop.permute.xlu0 %343 }
  0xcd   : > { %vm378_vm3 = vcmp.eq.s32.totalorder %v1436_v47, %v344_v15 }
  0xcf   : > { %v341_v6 = vpop.permute.xlu1 %340 }
  0xd0   : > { %vm377_vm7 = vcmp.eq.s32.totalorder %v1436_v47, %v341_v6 }
  0xd1   : > { %vm393_vm8 = vmor %vm297_vm5, %vm377_vm7 }
  0xd2   : > { %vm1015_vm9 = vmpackc.low %vm393_vm8, %vm392_vm6 }
  0xd3   : > { %1016 = vmatmul.msk.bf16.gmra.mxu0 %vm1015_vm9, %v1291_v51 }
  0xd8   : > { %v291_v12 = vpop.permute.xlu1 %290 }
  0xd9   : > { %vm307_vm14 = vcmp.eq.s32.totalorder %v1436_v47, %v291_v12 }
  0xda   : > { %vm403_vm15 = vmor %vm307_vm14, %vm387_vm12 }
  0xdb   : > { %vm1025_vm0 = vmpackc.low %vm403_vm15, %vm402_vm13 }
  0xdc   : > { %1026 = vmatmul.msk.bf16.gmra.mxu2 %vm1025_vm0, %v1291_v51 }
  0xe0   : > { %v264_v13 = vpop.permute.xlu1 %263 }
  0xe1   : > { %vm298_vm1 = vcmp.eq.s32.totalorder %v1436_v47, %v264_v13 }
  0xe2   : > { %vm394_vm4 = vmor %vm298_vm1, %vm378_vm3 }
  0xe9   : > { %v347_v16 = vpop.permute.xlu1 %346 }
  0xea   : > { %vm379_vm5 = vcmp.eq.s32.totalorder %v1436_v47, %v347_v16 }
  0xeb   : > { %vm395_vm6 = vmor %vm299_vm2, %vm379_vm5 }
  0xec   : > { %vm1017_vm7 = vmpackc.low %vm395_vm6, %vm394_vm4 }
  0xed   : > { %1018 = vmatmul.msk.bf16.gmra.mxu0 %vm1017_vm7, %v1291_v51 }
 0x11a   : > { %v541_v21 = vpop.f32.mrf.mxu2 }
 0x11b   : > { %v542_v24 = vadd.f32 %v1159_v23, %v541_v21 }
 0x11c   : > { %v521_v22 = vpop.f32.mrf.mxu0 }
 0x11d   : > { %v522_v26 = vadd.f32 %v1159_v23, %v521_v22  ;;  %v569_v29 = vmax.f32 %v542_v24, 0.0 }
 0x11f   : > { %v561_v32 = vmax.f32 %v522_v26, 0.0 }
 0x122   : > { %v543_v25 = vpop.f32.mrf.mxu2 }
 0x123   : > { %v544_v27 = vadd.f32 %v1159_v23, %v543_v25 }
 0x124   : > { %v523_v28 = vpop.f32.mrf.mxu0 }
 0x125   : > { %v570_v30 = vmax.f32 %v544_v27, 0.0  ;;  %v524_v31 = vadd.f32 %v1159_v23, %v523_v28 }
 0x127   : > { %v562_v33 = vmax.f32 %v524_v31, 0.0  ;;  %v581_v34 = vpack.c.bf16 %v570_v30, %v569_v29 }
 0x129   : > { %681 = vmatmul.bf16.vlgmr.msra.gmra.mxu3 %v581_v34  ;;  %v577_v35 = vpack.c.bf16 %v562_v33, %v561_v32 }
 0x12b   : > { %v546_v36 = vpop.f32.mrf.mxu2  ;;  %661 = vmatmul.bf16.vlgmr.msra.gmra.mxu1 %v577_v35 }
 0x12c   : > { %v547_v37 = vadd.f32 %v1159_v23, %v546_v36 }
 0x12e   : > { %v571_v40 = vmax.f32 %v547_v37, 0.0 }
 0x133   : > { %v548_v38 = vpop.f32.mrf.mxu2 }
 0x134   : > { %v549_v39 = vadd.f32 %v1159_v23, %v548_v38 }
 0x136   : > { %v572_v41 = vmax.f32 %v549_v39, 0.0  ;;  %v526_v42 = vpop.f32.mrf.mxu0 }
 0x137   : > { %v527_v44 = vadd.f32 %v1159_v23, %v526_v42 }
 0x138   : > { %v582_v43 = vpack.c.bf16 %v572_v41, %v571_v40 }
 0x139   : > { %v563_v47 = vmax.f32 %v527_v44, 0.0 }
 0x13a   : > { %686 = vmatmul.bf16.gmra.mxu3 %v582_v43 }
 0x13e   : > { %v528_v45 = vpop.f32.mrf.mxu0 }
 0x13f   : > { %v529_v46 = vadd.f32 %v1159_v23, %v528_v45 }
 0x141   : > { %v564_v48 = vmax.f32 %v529_v46, 0.0 }
 0x143   : > { %v578_v49 = vpack.c.bf16 %v564_v48, %v563_v47 }
 0x144   : > { %v551_v50 = vpop.f32.mrf.mxu2 }
 0x145   : > { %666 = vmatmul.bf16.gmra.mxu1 %v578_v49  ;;  %v552_v51 = vadd.f32 %v1159_v23, %v551_v50 }
 0x147   : > { %v573_v54 = vmax.f32 %v552_v51, 0.0 }
 0x14c   : > { %v553_v52 = vpop.f32.mrf.mxu2 }
 0x14d   : > { %v554_v53 = vadd.f32 %v1159_v23, %v553_v52 }
 0x14f   : > { %v574_v55 = vmax.f32 %v554_v53, 0.0 }
 0x150   : > { %v531_v56 = vpop.f32.mrf.mxu0 }
 0x151   : > { %v583_v57 = vpack.c.bf16 %v574_v55, %v573_v54  ;;  %v532_v58 = vadd.f32 %v1159_v23, %v531_v56 }
 0x153   : > { %691 = vmatmul.bf16.gmra.mxu3 %v583_v57  ;;  %v565_v61 = vmax.f32 %v532_v58, 0.0 }
 0x158   : > { %v533_v59 = vpop.f32.mrf.mxu0 }
 0x159   : > { %v534_v60 = vadd.f32 %v1159_v23, %v533_v59 }
 0x15b   : > { %v566_v62 = vmax.f32 %v534_v60, 0.0 }
 0x15d   : > { %v579_v63 = vpack.c.bf16 %v566_v62, %v565_v61 }
 0x15f   : > { %v556_v0 = vpop.f32.mrf.mxu2  ;;  %671 = vmatmul.bf16.gmra.mxu1 %v579_v63 }
 0x160   : > { %v557_v1 = vadd.f32 %v1159_v23, %v556_v0 }
 0x162   : > { %v575_v4 = vmax.f32 %v557_v1, 0.0 }
 0x167   : > { %v558_v2 = vpop.f32.mrf.mxu2 }
 0x168   : > { %v559_v3 = vadd.f32 %v1159_v23, %v558_v2 }
 0x16a   : > { %v576_v5 = vmax.f32 %v559_v3, 0.0  ;;  %v536_v6 = vpop.f32.mrf.mxu0 }
 0x16b   : > { %v537_v8 = vadd.f32 %v1159_v23, %v536_v6 }
 0x16c   : > { %v584_v7 = vpack.c.bf16 %v576_v5, %v575_v4 }
 0x16d   : > { %v567_v11 = vmax.f32 %v537_v8, 0.0 }
 0x16e   : > { %696 = vmatmul.bf16.gmra.mxu3 %v584_v7 }
 0x172   : > { %v538_v9 = vpop.f32.mrf.mxu0 }
 0x173   : > { %v539_v10 = vadd.f32 %v1159_v23, %v538_v9 }
 0x175   : > { %v568_v12 = vmax.f32 %v539_v10, 0.0 }
 0x177   : > { %v580_v13 = vpack.c.bf16 %v568_v12, %v567_v11 }
 0x179   : > { %676 = vmatmul.bf16.gmra.mxu1 %v580_v13 }
 0x1a8   : > { %v662_v15 = vpop.f32.mrf.mxu1 }
 0x1a9   : > { %v663_v16 = vadd.f32 %v1160_v14, %v662_v15 }
 0x1ab   : > { %702 = vmax.xlane.f32.xlu2 %v663_v16 }
 0x1ac   : > { %v682_v17 = vpop.f32.mrf.mxu3 }
 0x1ad   : > { %v683_v21 = vadd.f32 %v1160_v14, %v682_v17 }
 0x1b0   : > { %v664_v18 = vpop.f32.mrf.mxu1 }
 0x1b1   : > { %v665_v19 = vadd.f32 %v1160_v14, %v664_v18 }
 0x1b3   : > { %704 = vmax.xlane.f32.xlu0 %v665_v19 }
 0x1b4   : > { %v684_v20 = vpop.f32.mrf.mxu3 }
 0x1b5   : > { %v685_v28 = vadd.f32 %v1160_v14, %v684_v20 }
 0x1bb   : > { %718 = vmax.xlane.f32.xlu0 %v683_v21 }
 0x1bd   : > { %v687_v22 = vpop.f32.mrf.mxu3 }
 0x1be   : > { %v688_v30 = vadd.f32 %v1160_v14, %v687_v22 }
 0x1c2   : > { %v667_v23 = vpop.f32.mrf.mxu1 }
 0x1c3   : > { %v668_v24 = vadd.f32 %v1160_v14, %v667_v23 }
 0x1c5   : > { %v689_v25 = vpop.f32.mrf.mxu3  ;;  %706 = vmax.xlane.f32.xlu1 %v668_v24 }
 0x1c6   : > { %v690_v26 = vadd.f32 %v1160_v14, %v689_v25 }
 0x1c8   : > { %724 = vmax.xlane.f32.xlu0 %v690_v26 }
 0x1ca   : > { %v669_v27 = vpop.f32.mrf.mxu1 }
 0x1cb   : > { %v670_v29 = vadd.f32 %v1160_v14, %v669_v27 }
 0x1cd   : > { %708 = vmax.xlane.f32.xlu2 %v670_v29  ;;  %720 = vmax.xlane.f32.xlu1 %v685_v28 }
 0x1d5   : > { %722 = vmax.xlane.f32.xlu2 %v688_v30 }
 0x1d6   : > { %v692_v31 = vpop.f32.mrf.mxu3 }
 0x1d7   : > { %v1508_v32 = vadd.f32 %v1160_v14, %v692_v31 }
 0x1d9   : > { %726 = vmax.xlane.f32.xlu1 %v1508_v32 }
 0x1dc   : > { %v672_v33 = vpop.f32.mrf.mxu1 }
 0x1dd   : > { %v1511_v34 = vadd.f32 %v1160_v14, %v672_v33 }
 0x1de   : > { %v694_v37 = vpop.f32.mrf.mxu3 }
 0x1df   : > { %710 = vmax.xlane.f32.xlu2 %v1511_v34  ;;  %v1529_v46 = vadd.f32 %v1160_v14, %v694_v37 }
 0x1e4   : > { %v674_v35 = vpop.f32.mrf.mxu1 }
 0x1e5   : > { %v1514_v36 = vadd.f32 %v1160_v14, %v674_v35 }
 0x1e7   : > { %712 = vmax.xlane.f32.xlu0 %v1514_v36 }
 0x1f1   : > { %v697_v38 = vpop.f32.mrf.mxu3 }
 0x1f2   : > { %v1517_v39 = vadd.f32 %v1160_v14, %v697_v38 }
 0x1f4   : > { %730 = vmax.xlane.f32.xlu0 %v1517_v39 }
 0x1f6   : > { %v677_v40 = vpop.f32.mrf.mxu1 }
 0x1f7   : > { %v1520_v41 = vadd.f32 %v1160_v14, %v677_v40 }
 0x1f9   : > { %714 = vmax.xlane.f32.xlu1 %v1520_v41  ;;  %v699_v42 = vpop.f32.mrf.mxu3 }
 0x1fa   : > { %v1523_v44 = vadd.f32 %v1160_v14, %v699_v42 }
 0x1fe   : > { %v679_v43 = vpop.f32.mrf.mxu1 }
 0x1ff   : > { %v1525_v45 = vadd.f32 %v1160_v14, %v679_v43 }
 0x201   : > { %716 = vmax.xlane.f32.xlu2 %v1525_v45  ;;  %732 = vmax.xlane.f32.xlu1 %v1523_v44 }
 0x209   : > { %728 = vmax.xlane.f32.xlu2 %v1529_v46 }
 0x21e   : > { %v703_v47 = vpop.xlane.xlu2 %702 }
 0x21f   : > { %v1532_v48 = vsub.f32 %v663_v16, %v703_v47 }
 0x221   : > { %v750_v49 = vmul.f32 1.442695, %v1532_v48 }
 0x223   : > { %1161 = vpow2.f32 %v750_v49 }
 0x226   : > { %v705_v50 = vpop.xlane.xlu0 %704 }
 0x227   : > { %v1535_v51 = vsub.f32 %v665_v19, %v705_v50 }
 0x229   : > { %v1162_v52 = vpop.eup %1161  ;;  %v752_v53 = vmul.f32 1.442695, %v1535_v51 }
 0x22a   : > { %782 = vadd.xlane.f32.xlu2 %v1162_v52 }
 0x22b   : > { %1163 = vpow2.f32 %v752_v53 }
 0x22e   : > { %v719_v54 = vpop.xlane.xlu0 %718 }
 0x22f   : > { %v1538_v55 = vsub.f32 %v683_v21, %v719_v54 }
 0x231   : > { %v1164_v56 = vpop.eup %1163  ;;  %v766_v57 = vmul.f32 1.442695, %v1538_v55 }
 0x232   : > { %784 = vadd.xlane.f32.xlu0 %v1164_v56 }
 0x233   : > { %1165 = vpow2.f32 %v766_v57 }
 0x238   : > { %v707_v58 = vpop.xlane.xlu1 %706 }
 0x239   : > { %v1166_v59 = vpop.eup %1165  ;;  %v1541_v60 = vsub.f32 %v668_v24, %v707_v58 }
 0x23a   : > { %798 = vadd.xlane.f32.xlu1 %v1166_v59 }
 0x23b   : > { %v754_v61 = vmul.f32 1.442695, %v1541_v60  ;;  %v725_v62 = vpop.xlane.xlu0 %724 }
 0x23c   : > { %v1544_v63 = vsub.f32 %v690_v26, %v725_v62 }
 0x23d   : > { %1167 = vpow2.f32 %v754_v61 }
 0x23e   : > { %v772_v2 = vmul.f32 1.442695, %v1544_v63 }
 0x240   : > { %v709_v0 = vpop.xlane.xlu2 %708  ;;  %v721_v1 = vpop.xlane.xlu1 %720  ;;  %1169 = vpow2.f32 %v772_v2 }
 0x241   : > { %v1547_v3 = vsub.f32 %v685_v28, %v721_v1  ;;  %v1550_v6 = vsub.f32 %v670_v29, %v709_v0 }
 0x243   : > { %v1168_v4 = vpop.eup %1167  ;;  %v768_v5 = vmul.f32 1.442695, %v1547_v3  ;;  %v756_v9 = vmul.f32 1.442695, %v1550_v6 }
 0x244   : > { %786 = vadd.xlane.f32.xlu1 %v1168_v4 }
 0x245   : > { %1171 = vpow2.f32 %v768_v5 }
 0x246   : > { %v1170_v10 = vpop.eup %1169 }
 0x248   : > { %v723_v7 = vpop.xlane.xlu2 %722 }
 0x249   : > { %v1552_v8 = vsub.f32 %v688_v30, %v723_v7 }
 0x24b   : > { %v770_v11 = vmul.f32 1.442695, %v1552_v8  ;;  %v1172_v12 = vpop.eup %1171 }
 0x24c   : > { %v727_v13 = vpop.xlane.xlu1 %726  ;;  %804 = vadd.xlane.f32.xlu1 %v1170_v10  ;;  %800 = vadd.xlane.f32.xlu2 %v1172_v12 }
 0x24d   : > { %1173 = vpow2.f32 %v770_v11  ;;  %v1557_v14 = vsub.f32 %v1508_v32, %v727_v13 }
 0x24e   : > { %1175 = vpow2.f32 %v756_v9 }
 0x24f   : > { %v774_v15 = vmul.f32 1.442695, %v1557_v14 }
 0x251   : > { %1177 = vpow2.f32 %v774_v15 }
 0x252   : > { %v711_v16 = vpop.xlane.xlu2 %710 }
 0x253   : > { %v1174_v17 = vpop.eup %1173  ;;  %v1561_v18 = vsub.f32 %v1511_v34, %v711_v16 }
 0x254   : > { %v1176_v19 = vpop.eup %1175  ;;  %802 = vadd.xlane.f32.xlu0 %v1174_v17 }
 0x255   : > { %v758_v20 = vmul.f32 1.442695, %v1561_v18  ;;  %788 = vadd.xlane.f32.xlu2 %v1176_v19 }
 0x257   : > { %1179 = vpow2.f32 %v758_v20  ;;  %v1178_v23 = vpop.eup %1177 }
 0x25a   : > { %v713_v21 = vpop.xlane.xlu0 %712 }
 0x25b   : > { %v1565_v22 = vsub.f32 %v1514_v36, %v713_v21 }
 0x25d   : > { %v1180_v24 = vpop.eup %1179  ;;  %v760_v25 = vmul.f32 1.442695, %v1565_v22  ;;  %806 = vadd.xlane.f32.xlu2 %v1178_v23 }
 0x25e   : > { %790 = vadd.xlane.f32.xlu0 %v1180_v24 }
 0x25f   : > { %1181 = vpow2.f32 %v760_v25 }
 0x265   : > { %v1182_v26 = vpop.eup %1181 }
 0x266   : > { %792 = vadd.xlane.f32.xlu1 %v1182_v26 }
 0x267   : > { %v731_v27 = vpop.xlane.xlu0 %730 }
 0x268   : > { %v1569_v28 = vsub.f32 %v1517_v39, %v731_v27 }
 0x26a   : > { %v778_v29 = vmul.f32 1.442695, %v1569_v28 }
 0x26c   : > { %1183 = vpow2.f32 %v778_v29  ;;  %v715_v30 = vpop.xlane.xlu1 %714 }
 0x26d   : > { %v1573_v31 = vsub.f32 %v1520_v41, %v715_v30 }
 0x26f   : > { %v762_v32 = vmul.f32 1.442695, %v1573_v31 }
 0x271   : > { %1185 = vpow2.f32 %v762_v32 }
 0x272   : > { %v1184_v33 = vpop.eup %1183 }
 0x273   : > { %810 = vadd.xlane.f32.xlu1 %v1184_v33 }
 0x274   : > { %v717_v34 = vpop.xlane.xlu2 %716  ;;  %v733_v35 = vpop.xlane.xlu1 %732 }
 0x275   : > { %v1577_v36 = vsub.f32 %v1525_v45, %v717_v34  ;;  %v1580_v37 = vsub.f32 %v1523_v44, %v733_v35 }
 0x277   : > { %v1186_v38 = vpop.eup %1185  ;;  %v764_v39 = vmul.f32 1.442695, %v1577_v36  ;;  %v780_v40 = vmul.f32 1.442695, %v1580_v37 }
 0x278   : > { %794 = vadd.xlane.f32.xlu2 %v1186_v38 }
 0x279   : > { %1187 = vpow2.f32 %v764_v39 }
 0x27a   : > { %1189 = vpow2.f32 %v780_v40 }
 0x27c   : > { %v729_v41 = vpop.xlane.xlu2 %728 }
 0x27d   : > { %v1585_v42 = vsub.f32 %v1529_v46, %v729_v41 }
 0x27f   : > { %v1188_v43 = vpop.eup %1187  ;;  %v776_v45 = vmul.f32 1.442695, %v1585_v42 }
 0x280   : > { %v1190_v47 = vpop.eup %1189  ;;  %796 = vadd.xlane.f32.xlu0 %v1188_v43 }
 0x281   : > { %1191 = vpow2.f32 %v776_v45  ;;  %812 = vadd.xlane.f32.xlu2 %v1190_v47 }
 0x287   : > { %v1192_v44 = vpop.eup %1191 }
 0x288   : > { %808 = vadd.xlane.f32.xlu0 %v1192_v44 }
 0x29d   : > { %v783_v49 = vpop.xlane.xlu2 %782 }
 0x29e   : > { %1193 = vlog2.f32 %v783_v49 }
 0x2a4   : > { %v1194_v50 = vpop.eup %1193 }
 0x2a5   : > { %v815_v52 = vmul.f32 0.6931472, %v1194_v50  ;;  %v785_v53 = vpop.xlane.xlu0 %784 }
 0x2a6   : > { %1195 = vlog2.f32 %v785_v53 }
 0x2a7   : > { %v846_v46 = vsub.f32 %v1532_v48, %v815_v52 }
 0x2a9   : > { %862 = vst [vmem:[%s1592_s16] sm:$0xff] %v846_v46 }
 0x2ac   : > { %v1196_v54 = vpop.eup %1195 }
 0x2ad   : > { %v817_v56 = vmul.f32 0.6931472, %v1196_v54  ;;  %v799_v57 = vpop.xlane.xlu1 %798 }
 0x2ae   : > { %1197 = vlog2.f32 %v799_v57 }
 0x2af   : > { %v847_v58 = vsub.f32 %v1535_v51, %v817_v56 }
 0x2b1   : > { %863 = vst [vmem:[%s1592_s16 + $0x8] sm:$0xff] %v847_v58 }
 0x2b4   : > { %v1198_v59 = vpop.eup %1197 }
 0x2b5   : > { %v831_v61 = vmul.f32 0.6931472, %v1198_v59 }
 0x2b7   : > { %v854_v62 = vsub.f32 %v1538_v55, %v831_v61  ;;  %v787_v0 = vpop.xlane.xlu1 %786 }
 0x2b8   : > { %1199 = vlog2.f32 %v787_v0 }
 0x2b9   : > { %870 = vst [vmem:[%s1592_s16 + $0x40] sm:$0xff] %v854_v62 }
 0x2be   : > { %v1200_v48 = vpop.eup %1199 }
 0x2bf   : > { %v819_v1 = vmul.f32 0.6931472, %v1200_v48  ;;  %v805_v2 = vpop.xlane.xlu1 %804  ;;  %v801_v4 = vpop.xlane.xlu2 %800 }
 0x2c0   : > { %1201 = vlog2.f32 %v805_v2 }
 0x2c1   : > { %v848_v5 = vsub.f32 %v1541_v60, %v819_v1  ;;  %1203 = vlog2.f32 %v801_v4 }
 0x2c3   : > { %864 = vst [vmem:[%s1592_s16 + $0x10] sm:$0xff] %v848_v5 }
 0x2c6   : > { %v1202_v51 = vpop.eup %1201 }
 0x2c7   : > { %v1204_v7 = vpop.eup %1203  ;;  %v837_v9 = vmul.f32 0.6931472, %v1202_v51  ;;  %v803_v10 = vpop.xlane.xlu0 %802 }
 0x2c8   : > { %v833_v11 = vmul.f32 0.6931472, %v1204_v7  ;;  %v789_v55 = vpop.xlane.xlu2 %788  ;;  %1205 = vlog2.f32 %v803_v10 }
 0x2c9   : > { %v857_v12 = vsub.f32 %v1544_v63, %v837_v9  ;;  %1207 = vlog2.f32 %v789_v55 }
 0x2ca   : > { %v855_v13 = vsub.f32 %v1547_v3, %v833_v11 }
 0x2cb   : > { %873 = vst [vmem:[%s1592_s16 + $0x58] sm:$0xff] %v857_v12 }
 0x2cc   : > { %871 = vst [vmem:[%s1592_s16 + $0x48] sm:$0xff] %v855_v13 }
 0x2ce   : > { %v1206_v15 = vpop.eup %1205 }
 0x2cf   : > { %v1208_v60 = vpop.eup %1207  ;;  %v835_v16 = vmul.f32 0.6931472, %v1206_v15 }
 0x2d0   : > { %v821_v17 = vmul.f32 0.6931472, %v1208_v60  ;;  %v807_v19 = vpop.xlane.xlu2 %806 }
 0x2d1   : > { %v856_v20 = vsub.f32 %v1552_v8, %v835_v16  ;;  %1209 = vlog2.f32 %v807_v19  ;;  %v791_v21 = vpop.xlane.xlu0 %790 }
 0x2d2   : > { %v849_v23 = vsub.f32 %v1550_v6, %v821_v17  ;;  %1211 = vlog2.f32 %v791_v21 }
 0x2d3   : > { %872 = vst [vmem:[%s1592_s16 + $0x50] sm:$0xff] %v856_v20 }
 0x2d4   : > { %865 = vst [vmem:[%s1592_s16 + $0x18] sm:$0xff] %v849_v23 }
 0x2d7   : > { %v1210_v63 = vpop.eup %1209 }
 0x2d8   : > { %v1212_v3 = vpop.eup %1211  ;;  %v839_v24 = vmul.f32 0.6931472, %v1210_v63 }
 0x2d9   : > { %v823_v25 = vmul.f32 0.6931472, %v1212_v3  ;;  %v793_v26 = vpop.xlane.xlu1 %792 }
 0x2da   : > { %v858_v27 = vsub.f32 %v1557_v14, %v839_v24  ;;  %1213 = vlog2.f32 %v793_v26 }
 0x2db   : > { %v850_v8 = vsub.f32 %v1561_v18, %v823_v25 }
 0x2dc   : > { %874 = vst [vmem:[%s1592_s16 + $0x60] sm:$0xff] %v858_v27 }
 0x2dd   : > { %866 = vst [vmem:[%s1592_s16 + $0x20] sm:$0xff] %v850_v8 }
 0x2e0   : > { %v1214_v29 = vpop.eup %1213 }
 0x2e1   : > { %v825_v30 = vmul.f32 0.6931472, %v1214_v29 }
 0x2e3   : > { %v851_v6 = vsub.f32 %v1565_v22, %v825_v30 }
 0x2e5   : > { %867 = vst [vmem:[%s1592_s16 + $0x28] sm:$0xff] %v851_v6 }
 0x2e6   : > { %v811_v32 = vpop.xlane.xlu1 %810 }
 0x2e7   : > { %1215 = vlog2.f32 %v811_v32 }
 0x2eb   : > { %v795_v33 = vpop.xlane.xlu2 %794 }
 0x2ec   : > { %1217 = vlog2.f32 %v795_v33 }
 0x2ed   : > { %v1216_v34 = vpop.eup %1215 }
 0x2ee   : > { %v843_v35 = vmul.f32 0.6931472, %v1216_v34 }
 0x2f0   : > { %v860_v14 = vsub.f32 %v1569_v28, %v843_v35 }
 0x2f2   : > { %v1218_v38 = vpop.eup %1217  ;;  %876 = vst [vmem:[%s1592_s16 + $0x70] sm:$0xff] %v860_v14 }
 0x2f3   : > { %v827_v18 = vmul.f32 0.6931472, %v1218_v38  ;;  %v797_v39 = vpop.xlane.xlu0 %796 }
 0x2f4   : > { %v813_v40 = vpop.xlane.xlu2 %812  ;;  %1219 = vlog2.f32 %v797_v39 }
 0x2f5   : > { %v852_v22 = vsub.f32 %v1573_v31, %v827_v18  ;;  %1221 = vlog2.f32 %v813_v40 }
 0x2f7   : > { %868 = vst [vmem:[%s1592_s16 + $0x30] sm:$0xff] %v852_v22 }
 0x2fa   : > { %v1220_v41 = vpop.eup %1219 }
 0x2fb   : > { %v1222_v43 = vpop.eup %1221  ;;  %v829_v45 = vmul.f32 0.6931472, %v1220_v41  ;;  %v809_v47 = vpop.xlane.xlu0 %808 }
 0x2fc   : > { %v845_v28 = vmul.f32 0.6931472, %v1222_v43  ;;  %1223 = vlog2.f32 %v809_v47 }
 0x2fd   : > { %v853_v44 = vsub.f32 %v1577_v36, %v829_v45 }
 0x2fe   : > { %v861_v49 = vsub.f32 %v1580_v37, %v845_v28 }
 0x2ff   : > { %869 = vst [vmem:[%s1592_s16 + $0x38] sm:$0xff] %v853_v44 }
 0x300   : > { %877 = vst [vmem:[%s1592_s16 + $0x78] sm:$0xff] %v861_v49 }
 0x302   : > { %v1224_v31 = vpop.eup %1223 }
 0x303   : > { %v841_v50 = vmul.f32 0.6931472, %v1224_v31 }
 0x305   : > { %v859_v52 = vsub.f32 %v1585_v42, %v841_v50 }
 0x307   : > { %875 = vst [vmem:[%s1592_s16 + $0x68] sm:$0xff] %v859_v52 }
 0x308   : > { %1252 = shalt.err (!%p1249_p3)
}
 0x309   : > { %s1292_s14 = smov 128   ;;  %s1293_s15 = smov 8  }
 0x30a   : > { %1097 = dma.vmem_to_hbm [thread:$0]  (%p1362_p5), %s892_s30, 2048, %s894_s6, %s879_s22, %s1292_s14, %s1292_s14, %s1293_s15  }
 0x30b PF: > { %p1103_p4 = scmp.ge.s32.totalorder %s1287_s21, 2  ;;  %s908_s16 = sand.u32 1, %s1275_s18  }
 0x30c   : > { %s909_s17 = scalar_lea.sflag [#allocation3], %s908_s16 }
 0x30d   : > { %p1100_p7 = pnand %p1103_p4, %p1366_p6 }
 0x30f   : > { %p1101_p8 = pneg %p1100_p7 }
 0x311   : > { %1270 = dma.done.wait (%p1101_p8), %s909_s17, 2048  }
 0x312   : > { %1272 = vsyncadd (%p1101_p8), %s909_s17, 4294965248  ;;  %p15_p9 = scmp.ge.s32.totalorder %s1349_s24, 4   ;;  %s1667_s18 = smov %s1279_s19 }
 0x313   : > { %s1668_s19 = smov %s1283_s20  ;;  %s1669_s20 = smov %s1360_s27 }
 0x314   : > { %s1670_s21 = smov %s1349_s24  ;;  %17 = sbr.rel (!%p15_p9) target bundleno = 3 (0x3), region = 75 }
 0x319   :  { %915 = vsyncpa [#allocation3], 1 }
 0x31a   :  { %917 = vsyncpa [#allocation3 + $0x1], 1 }

</bundles_post_ra>
